<compile_context>
chip_gen: v6e
topology: v6e:2x2x1
jax: 0.10.0
libtpu: 0.0.40
codegen_flags: <defaults>
</compile_context>

<pallas_src>
import functools

import jax
import jax.numpy as jnp
from jax.experimental import pallas as pl
from jax.experimental.pallas import tpu as pltpu


def _round_up(x, m):
    return ((x + m - 1) // m) * m


def _cdiv(a, b):
    return (a + b - 1) // b


def _tpu_vmem_and_cores():
    """Per-generation (VMEM bytes per core, TensorCores per chip), with safe fallbacks."""
    kind = ""
    try:
        kind = jax.devices()[0].device_kind.lower()
    except Exception:
        pass
    num_tc = 2 if any(t in kind for t in ("v7", "v4", "v5p", "v5 p")) else 1
    vmem = None
    try:
        vmem = int(pltpu.get_tpu_info().vmem_capacity_bytes)
    except Exception:
        vmem = None
    if not vmem or vmem <= 0:
        vmem = 64 * 1024 * 1024 if "v7" in kind else 128 * 1024 * 1024
    return vmem, num_tc


def _select_tiles(n, d_model, d_ff, x_it, w_it, o_it, vmem_bytes, num_tc,
                  block_rows=None, block_ff=None):
    """Pick (block_rows, block_ff) against the per-generation VMEM budget."""
    row_align = 16 if w_it <= 2 else 8          # bf16 packs 16 sublanes per vreg
    budget = int(vmem_bytes * 0.70)             # headroom for compiler temporaries
    row_cap = 2048 if vmem_bytes >= 96 * 1024 * 1024 else 1024

    def max_rows_for(bf):
        # double-buffered x / out tiles + double-buffered weight slices + f32 h + f32 acc
        fixed = 4 * d_model * bf * w_it + 2 * bf * 4 + 2 * d_model * 4
        per_row = 2 * d_model * x_it + 2 * d_model * o_it + bf * 4 + d_model * 4
        return max(0, (budget - fixed) // per_row)

    if block_ff is None:
        # Full weight residency (block index constant -> W1/W2 DMA'd once) as long as a
        # useful row tile still fits alongside them.
        needed_rows = min(128, _round_up(max(n, 1), row_align))
        if max_rows_for(d_ff) >= needed_rows:
            block_ff = d_ff
        else:
            block_ff = None
            for cand in (512, 256, 128):        # 256-aligned preferred for v6e/v7x MXU
                if d_ff % cand == 0 and max_rows_for(cand) >= row_align:
                    block_ff = cand
                    break
            if block_ff is None:
                block_ff = d_ff                 # last resort; let the compiler cope
    elif block_ff != d_ff:
        assert d_ff % block_ff == 0 and block_ff % 128 == 0, (
            "block_ff must divide d_ff and be a multiple of 128 (or equal d_ff)")

    if block_rows is None:
        block_rows = min(row_cap, max(row_align, max_rows_for(block_ff)))
        block_rows = min(block_rows, _round_up(max(n, 1), row_align))
        if num_tc > 1 and n >= num_tc * row_align:
            # keep >= one row tile per TensorCore so the "parallel" axis can shard
            block_rows = min(block_rows, _round_up(_cdiv(n, num_tc), row_align))
        block_rows = max(row_align, (block_rows // row_align) * row_align)
    else:
        block_rows = max(row_align, _round_up(block_rows, row_align))

    return block_rows, block_ff


def _ffn_kernel_single(x_ref, w1_ref, b1_ref, w2_ref, b2_ref, o_ref):
    """Fully fused step (weights resident, no d_ff tiling, no accumulator RMW)."""
    x = x_ref[...].astype(w1_ref.dtype)
    h = jnp.dot(x, w1_ref[...], preferred_element_type=jnp.float32)
    h = jnp.maximum(h + b1_ref[...], 0.0)          # bias + ReLU in f32 on the VPU
    # dropout: identity (inference)
    h = h.astype(w2_ref.dtype)
    out = jnp.dot(h, w2_ref[...], preferred_element_type=jnp.float32) + b2_ref[...]
    o_ref[...] = out.astype(o_ref.dtype)


def _ffn_kernel_acc(x_ref, w1_ref, b1_ref, w2_ref, b2_ref, o_ref, acc_ref):
    """One (row-tile, d_ff-tile) step with f32 VMEM accumulator (d_ff = reduction axis)."""
    k = pl.program_id(1)

    @pl.when(k == 0)
    def _init():
        acc_ref[...] = jnp.zeros_like(acc_ref)

    x = x_ref[...].astype(w1_ref.dtype)
    h = jnp.dot(x, w1_ref[...], preferred_element_type=jnp.float32)
    h = jnp.maximum(h + b1_ref[...], 0.0)
    # dropout: identity (inference)
    h = h.astype(w2_ref.dtype)
    acc_ref[...] += jnp.dot(h, w2_ref[...], preferred_element_type=jnp.float32)

    @pl.when(k == pl.num_programs(1) - 1)
    def _finalize():
        o_ref[...] = (acc_ref[...] + b2_ref[...]).astype(o_ref.dtype)


@functools.partial(jax.jit, static_argnames=("block_rows", "block_ff", "vmem_limit_bytes"))
def positionwise_feedforward(x, w1, b1, w2, b2, *, block_rows=None, block_ff=None,
                             vmem_limit_bytes=None):
    """Linear -> ReLU -> Dropout(identity) -> Linear.

    x:  (batch, seq, d_model); w1: (d_model, d_ff); b1: (d_ff,);
    w2: (d_ff, d_model); b2: (d_model,).  Weights are used in the dtype they are passed
    (pass pre-cast bf16 weights for the MXU fast path); accumulation is always f32 and
    the output matches x.dtype.
    """
    batch, seq, d_model = x.shape
    d_ff = w1.shape[1]
    n = batch * seq

    x_it = jnp.dtype(x.dtype).itemsize
    w_it = jnp.dtype(w1.dtype).itemsize
    o_it = x_it

    vmem_bytes, num_tc = _tpu_vmem_and_cores()
    block_rows, block_ff = _select_tiles(
        n, d_model, d_ff, x_it, w_it, o_it, vmem_bytes, num_tc, block_rows, block_ff)

    n_row_tiles = _cdiv(n, block_rows)
    n_ff_tiles = d_ff // block_ff

    if vmem_limit_bytes is None:
        footprint = (2 * block_rows * d_model * x_it
                     + 4 * d_model * block_ff * w_it
                     + 2 * block_ff * 4 + 2 * d_model * 4
                     + 2 * block_rows * d_model * o_it
                     + block_rows * block_ff * 4
                     + block_rows * d_model * 4)
        vmem_limit_bytes = max(32 * 1024 * 1024, footprint + 4 * 1024 * 1024)
        vmem_limit_bytes = min(vmem_limit_bytes, vmem_bytes - 8 * 1024 * 1024)

    # No wrapper-side pad/cast HBM passes: reshape is free, biases are tiny, x is cast
    # in-kernel, and the ragged row tail is masked by the cdiv grid.
    x2d = x.reshape(n, d_model)
    b1_2d = b1.reshape(1, d_ff).astype(jnp.float32)
    b2_2d = b2.reshape(1, d_model).astype(jnp.float32)

    weight_passes = n_row_tiles if n_ff_tiles > 1 else 1
    cost = pl.CostEstimate(
        flops=4 * n * d_model * d_ff,
        transcendentals=0,
        bytes_accessed=(
            n * d_model * x_it
            + weight_passes * 2 * d_model * d_ff * w_it
            + weight_passes * (d_ff + d_model) * 4
            + n * d_model * o_it
        ),
    )

    if n_ff_tiles == 1:
        grid = (n_row_tiles,)
        in_specs = [
            pl.BlockSpec((block_rows, d_model), lambda i: (i, 0)),   # x row tile
            pl.BlockSpec((d_model, d_ff), lambda i: (0, 0)),         # W1 (resident)
            pl.BlockSpec((1, d_ff), lambda i: (0, 0)),               # b1
            pl.BlockSpec((d_ff, d_model), lambda i: (0, 0)),         # W2 (resident)
            pl.BlockSpec((1, d_model), lambda i: (0, 0)),            # b2
        ]
        out_spec = pl.BlockSpec((block_rows, d_model), lambda i: (i, 0))
        scratch = []
        kernel = _ffn_kernel_single
        semantics = ("parallel",)
    else:
        grid = (n_row_tiles, n_ff_tiles)                             # reduction axis last
        in_specs = [
            pl.BlockSpec((block_rows, d_model), lambda i, k: (i, 0)),
            pl.BlockSpec((d_model, block_ff), lambda i, k: (0, k)),  # W1[:, k]
            pl.BlockSpec((1, block_ff), lambda i, k: (0, k)),        # b1[k]
            pl.BlockSpec((block_ff, d_model), lambda i, k: (k, 0)),  # W2[k, :]
            pl.BlockSpec((1, d_model), lambda i, k: (0, 0)),         # b2
        ]
        out_spec = pl.BlockSpec((block_rows, d_model), lambda i, k: (i, 0))
        scratch = [pltpu.VMEM((block_rows, d_model), jnp.float32)]
        kernel = _ffn_kernel_acc
        semantics = ("parallel", "arbitrary")

    out2d = pl.pallas_call(
        kernel,
        out_shape=jax.ShapeDtypeStruct((n, d_model), x.dtype),
        grid_spec=pltpu.PrefetchScalarGridSpec(
            num_scalar_prefetch=0,
            grid=grid,
            in_specs=in_specs,
            out_specs=out_spec,
            scratch_shapes=scratch,
        ),
        compiler_params=pltpu.CompilerParams(
            dimension_semantics=semantics,
            vmem_limit_bytes=int(vmem_limit_bytes),
        ),
        cost_estimate=cost,
    )(x2d, w1, b1_2d, w2, b2_2d)

    return out2d.reshape(batch, seq, d_model)


def ffn_reference(x, w1, b1, w2, b2):
    """Plain-JAX reference (dropout is identity at inference), high-precision matmuls."""
    h = jnp.maximum(jnp.dot(x, w1, precision=jax.lax.Precision.HIGHEST) + b1, 0.0)
    return jnp.dot(h, w2, precision=jax.lax.Precision.HIGHEST) + b2


def init_params(key, d_model, d_ff, dtype=jnp.float32):
    """Deterministic init mimicking nn.Linear's uniform(-1/sqrt(fan_in), 1/sqrt(fan_in))."""
    k1, k2, k3, k4 = jax.random.split(key, 4)
    lim1 = 1.0 / (d_model ** 0.5)
    lim2 = 1.0 / (d_ff ** 0.5)
    # stored as (in_features, out_features) so the kernel computes x @ W + b
    w1 = jax.random.uniform(k1, (d_model, d_ff), dtype, minval=-lim1, maxval=lim1)
    b1 = jax.random.uniform(k2, (d_ff,), dtype, minval=-lim1, maxval=lim1)
    w2 = jax.random.uniform(k3, (d_ff, d_model), dtype, minval=-lim2, maxval=lim2)
    b2 = jax.random.uniform(k4, (d_model,), dtype, minval=-lim2, maxval=lim2)
    return w1, b1, w2, b2


if __name__ == "__main__":
    key = jax.random.PRNGKey(0)
    k_x, k_p = jax.random.split(key)

    # Small but lane-dense shapes (d_model, d_ff >= 128 keep stores unmasked).
    batch, seq, d_model, d_ff = 2, 128, 128, 256
    x = jax.random.normal(k_x, (batch, seq, d_model), jnp.float32)
    w1, b1, w2, b2 = init_params(k_p, d_model, d_ff)

    ref_full = ffn_reference(x, w1, b1, w2, b2)

    # 1) f32 path, forced multi-step grid (row tiles x d_ff tiles): exercises the
    #    accumulator init / accumulate / finalize kernel.
    out_f32 = positionwise_feedforward(x, w1, b1, w2, b2, block_rows=64, block_ff=128)
    out_f32 = jax.block_until_ready(out_f32)
    assert out_f32.shape == x.shape
    assert jnp.allclose(out_f32, ref_full, atol=5e-4, rtol=5e-4)

    # 2) ragged rows (N = 200, not a multiple of the auto row tile): exercises the masked
    #    tail path (no wrapper-side jnp.pad copy anymore).
    x_odd = x[:, :100, :]
    out_odd = positionwise_feedforward(x_odd, w1, b1, w2, b2)
    out_odd = jax.block_until_ready(out_odd)
    assert jnp.allclose(out_odd, ffn_reference(x_odd, w1, b1, w2, b2), atol=5e-4, rtol=5e-4)

    # 3) fast path: bf16 weights pre-cast ONCE outside the jitted wrapper; weights stay
    #    resident in VMEM and the fused single-step kernel is used (f32 accumulation).
    w1_bf, w2_bf = w1.astype(jnp.bfloat16), w2.astype(jnp.bfloat16)
    out_bf16 = positionwise_feedforward(x, w1_bf, b1, w2_bf, b2)
    out_bf16 = jax.block_until_ready(out_bf16)
    assert out_bf16.dtype == x.dtype
    assert jnp.allclose(out_bf16, ref_full, atol=5e-2, rtol=5e-2)

    print("KERNEL_OK")
</pallas_src>

<mosaic_0001>
module attributes {stable_mosaic.version = 11 : i64} {
  func.func @_ffn_kernel_acc(%arg0: i32, %arg1: i32, %arg2: memref<64x128xf32, #tpu.memory_space<vmem>>, %arg3: memref<128x128xf32, #tpu.memory_space<vmem>>, %arg4: memref<1x128xf32, #tpu.memory_space<vmem>>, %arg5: memref<128x128xf32, #tpu.memory_space<vmem>>, %arg6: memref<1x128xf32, #tpu.memory_space<vmem>>, %arg7: memref<64x128xf32, #tpu.memory_space<vmem>>, %arg8: memref<64x128xf32, #tpu.memory_space<vmem>>) attributes {dimension_semantics = [#tpu.dimension_semantics<parallel>, #tpu.dimension_semantics<arbitrary>], iteration_bounds = array<i64: 4, 2>, scalar_prefetch = 0 : i64, scratch_operands = 1 : i64, tpu.core_type = #tpu.core_type<tc>, window_params = [{transform_indices = @transform_0, window_bounds = array<i64: 64, 128>}, {transform_indices = @transform_1, window_bounds = array<i64: 128, 128>}, {transform_indices = @transform_2, window_bounds = array<i64: 1, 128>}, {transform_indices = @transform_3, window_bounds = array<i64: 128, 128>}, {pipeline_mode = #tpu.pipeline_mode<synchronous>, transform_indices = @transform_4, window_bounds = array<i64: 1, 128>}, {transform_indices = @transform_5, window_bounds = array<i64: 64, 128>}]} {
    %c0_i32 = arith.constant 0 : i32
    %0 = arith.cmpi eq, %arg1, %c0_i32 : i32
    %1 = arith.extui %0 : i1 to i32
    %c0_i32_0 = arith.constant 0 : i32
    %2 = arith.cmpi ne, %1, %c0_i32_0 : i32
    scf.if %2 {
      %cst_15 = arith.constant 0.000000e+00 : f32
      %19 = vector.broadcast %cst_15 : f32 to vector<64x128xf32>
      %c0_16 = arith.constant 0 : index
      %c0_17 = arith.constant 0 : index
      %20 = vector.load %arg8[%c0_16, %c0_17] : memref<64x128xf32, #tpu.memory_space<vmem>>, vector<64x128xf32>
      tpu.vector_store %arg8[%c0_16, %c0_17], %19 {strides = array<i32>} : memref<64x128xf32, #tpu.memory_space<vmem>>, vector<64x128xf32>,
    } else {
    }
    %c0 = arith.constant 0 : index
    %c0_1 = arith.constant 0 : index
    %3 = vector.load %arg2[%c0, %c0_1] : memref<64x128xf32, #tpu.memory_space<vmem>>, vector<64x128xf32>
    %c0_2 = arith.constant 0 : index
    %c0_3 = arith.constant 0 : index
    %4 = vector.load %arg3[%c0_2, %c0_3] : memref<128x128xf32, #tpu.memory_space<vmem>>, vector<128x128xf32>
    %cst = arith.constant dense<0.000000e+00> : vector<64x128xf32>
    %5 = tpu.matmul %3, %4, %cst {dimension_numbers = #tpu.dot_dimension_numbers<[1], [0], [0], [1], [0, 0, 1, 1], [], []>} : vector<64x128xf32>, vector<128x128xf32>, vector<64x128xf32> -> vector<64x128xf32>
    %c0_4 = arith.constant 0 : index
    %c0_5 = arith.constant 0 : index
    %6 = vector.load %arg4[%c0_4, %c0_5] : memref<1x128xf32, #tpu.memory_space<vmem>>, vector<1x128xf32>
    %7 = vector.broadcast %6 : vector<1x128xf32> to vector<64x128xf32>
    %8 = arith.addf %5, %7 : vector<64x128xf32>
    %cst_6 = arith.constant 0.000000e+00 : f32
    %9 = vector.broadcast %cst_6 : f32 to vector<64x128xf32>
    %10 = arith.maximumf %8, %9 : vector<64x128xf32>
    %c0_7 = arith.constant 0 : index
    %c0_8 = arith.constant 0 : index
    %11 = vector.load %arg8[%c0_7, %c0_8] : memref<64x128xf32, #tpu.memory_space<vmem>>, vector<64x128xf32>
    %c0_9 = arith.constant 0 : index
    %c0_10 = arith.constant 0 : index
    %12 = vector.load %arg5[%c0_9, %c0_10] : memref<128x128xf32, #tpu.memory_space<vmem>>, vector<128x128xf32>
    %cst_11 = arith.constant dense<0.000000e+00> : vector<64x128xf32>
    %13 = tpu.matmul %10, %12, %cst_11 {dimension_numbers = #tpu.dot_dimension_numbers<[1], [0], [0], [1], [0, 0, 1, 1], [], []>} : vector<64x128xf32>, vector<128x128xf32>, vector<64x128xf32> -> vector<64x128xf32>
    %14 = arith.addf %11, %13 : vector<64x128xf32>
    %c0_12 = arith.constant 0 : index
    %c0_13 = arith.constant 0 : index
    %15 = vector.load %arg8[%c0_12, %c0_13] : memref<64x128xf32, #tpu.memory_space<vmem>>, vector<64x128xf32>
    tpu.vector_store %arg8[%c0_12, %c0_13], %14 {strides = array<i32>} : memref<64x128xf32, #tpu.memory_space<vmem>>, vector<64x128xf32>,
    %c1_i32 = arith.constant 1 : i32
    %16 = arith.cmpi eq, %arg1, %c1_i32 : i32
    %17 = arith.extui %16 : i1 to i32
    %c0_i32_14 = arith.constant 0 : i32
    %18 = arith.cmpi ne, %17, %c0_i32_14 : i32
    scf.if %18 {
      %c0_15 = arith.constant 0 : index
      %c0_16 = arith.constant 0 : index
      %19 = vector.load %arg8[%c0_15, %c0_16] : memref<64x128xf32, #tpu.memory_space<vmem>>, vector<64x128xf32>
      %c0_17 = arith.constant 0 : index
      %c0_18 = arith.constant 0 : index
      %20 = vector.load %arg6[%c0_17, %c0_18] : memref<1x128xf32, #tpu.memory_space<vmem>>, vector<1x128xf32>
      %21 = vector.broadcast %20 : vector<1x128xf32> to vector<64x128xf32>
      %22 = arith.addf %19, %21 : vector<64x128xf32>
      %c0_19 = arith.constant 0 : index
      %c0_20 = arith.constant 0 : index
      %23 = vector.load %arg7[%c0_19, %c0_20] : memref<64x128xf32, #tpu.memory_space<vmem>>, vector<64x128xf32>
      tpu.vector_store %arg7[%c0_19, %c0_20], %22 {strides = array<i32>} : memref<64x128xf32, #tpu.memory_space<vmem>>, vector<64x128xf32>,
    } else {
    }
    return
  }
  func.func @transform_0(%arg0: i32, %arg1: i32) -> (i32, i32) {
    %c0_i32 = arith.constant 0 : i32
    %c0_i32_0 = arith.constant 0 : i32
    return %arg0, %c0_i32 : i32, i32
  }
  func.func @transform_1(%arg0: i32, %arg1: i32) -> (i32, i32) {
    %c0_i32 = arith.constant 0 : i32
    %c0_i32_0 = arith.constant 0 : i32
    return %c0_i32, %arg1 : i32, i32
  }
  func.func @transform_2(%arg0: i32, %arg1: i32) -> (i32, i32) {
    %c0_i32 = arith.constant 0 : i32
    %c0_i32_0 = arith.constant 0 : i32
    return %c0_i32, %arg1 : i32, i32
  }
  func.func @transform_3(%arg0: i32, %arg1: i32) -> (i32, i32) {
    %c0_i32 = arith.constant 0 : i32
    %c0_i32_0 = arith.constant 0 : i32
    return %arg1, %c0_i32 : i32, i32
  }
  func.func @transform_4(%arg0: i32, %arg1: i32) -> (i32, i32) {
    %c0_i32 = arith.constant 0 : i32
    %c0_i32_0 = arith.constant 0 : i32
    %c0_i32_1 = arith.constant 0 : i32
    return %c0_i32, %c0_i32_0 : i32, i32
  }
  func.func @transform_5(%arg0: i32, %arg1: i32) -> (i32, i32) {
    %c0_i32 = arith.constant 0 : i32
    %c0_i32_0 = arith.constant 0 : i32
    return %arg0, %c0_i32 : i32, i32
  }
}

</mosaic_0001>

<bundles_post_ra>
// kernel: positionwise_feedforward.1
= control target key start
LH: loop header
LB: loop body
LE: loop exit
PB: predicated region body
PF: predicated region fallthrough
CT: control target
= control target key end

     0   :  { %s1727_s0 = inlined_call_operand.hbm [shape: f32[256,128], index: 0, kind: input, shape index: {}]   ;;  %s1728_s1 = inlined_call_operand.hbm [shape: f32[128,256], index: 1, kind: input, shape index: {}]   ;;  %s1729_s2 = inlined_call_operand.vmem [shape: f32[1,256], index: 2, kind: input, shape index: {}]   ;;  %s1730_s3 = inlined_call_operand.hbm [shape: f32[256,128], index: 3, kind: input, shape index: {}]   ;;  %s1731_s4 = inlined_call_operand.vmem [shape: f32[1,128], index: 4, kind: input, shape index: {}]   ;;  %s1732_s5 = inlined_call_operand.hbm [shape: f32[256,128], index: 5, kind: output, shape index: {}]  }
   0x1   :  { %1747 = sst [smem:[#allocation22_spill]] %s1727_s0 }
   0x2   :  { %1748 = sst [smem:[#allocation23_spill]] %s1728_s1 }
   0x3   :  { %1749 = sst [smem:[#allocation24_spill]] %s1731_s4 }
   0x4   :  { %1750 = sst [smem:[#allocation25_spill]] %s1732_s5 }
   0x5   :  { %10 = vsyncpa [#allocation4], 0 }
   0x6   :  { %12 = vsyncpa [#allocation4 + $0x1], 0 }
   0x7   :  { %13 = vsyncpa [#allocation7], 0 }
   0x8   :  { %15 = vsyncpa [#allocation7 + $0x1], 0 }
   0x9   :  { %16 = vsyncpa [#allocation5], 0 }
   0xa   :  { %18 = vsyncpa [#allocation5 + $0x1], 0  ;;  %s1367_s18 = smov 0   ;;  %s1369_s19 = smov 0  }
   0xb   :  { %s1371_s20 = smov 0   ;;  %s1373_s21 = smov 0  }
   0xc   :  { %s1375_s22 = smov 0   ;;  %s1377_s23 = smov 0  }
   0xd   :  { %s1379_s24 = smov 0   ;;  %s1381_s25 = smov 0  }
   0xe   :  { %s1383_s26 = smov 0   ;;  %s1385_s27 = smov 0  }
   0xf   :  { %s1387_s28 = smov 0  }
  0x10 LB: > { %1751 = sst [smem:[#allocation13_spill]] %s1293_s20  ;;  %s33_s29 = sadd.s32 1, %s1317_s26  ;;  %s1325_s28 = sphi %s1387_s28, %s24_s28   ;;  %s1321_s27 = sphi %s1385_s27, %s1786_s27   ;;  %s1317_s26 = sphi %s1383_s26, %s1793_s26   ;;  %s1313_s25 = sphi %s1381_s25, %s1792_s25   ;;  %s1309_s24 = sphi %s1379_s24, %s1791_s24   ;;  %s1305_s23 = sphi %s1377_s23, %s1783_s23   ;;  %s1301_s22 = sphi %s1375_s22, %s1790_s22   ;;  %s1297_s21 = sphi %s1373_s21, %s1789_s21   ;;  %s1293_s20 = sphi %s1371_s20, %s1781_s20   ;;  %s1289_s19 = sphi %s1369_s19, %s1788_s19   ;;  %s1285_s18 = sphi %s1367_s18, %s1787_s18  }
  0x11   : > { %1752 = sst [smem:[#allocation14_spill]] %s1305_s23  ;;  %p51_p0 = scmp.eq.s32.totalorder %s1325_s28, 0 }
  0x12   : > { %1753 = sst [smem:[#allocation15_spill]] %s1313_s25  ;;  %p1424_p1 = scmp.ge.s32.totalorder %s33_s29, 2 }
  0x13   : > { %1754 = sst [smem:[#allocation16_spill]] %s1321_s27  ;;  %s69_s6 = sadd.s32 1, %s1293_s20 }
  0x14   : > { %p76_p2 = scmp.ne.s32.totalorder %s1293_s20, %s1289_s19  ;;  %p82_p3 = scmp.ne.s32.totalorder %s1289_s19, %s1285_s18 }
  0x15   : > { %s1795_s29 = smov (%p1424_p1, %s33_s29), 0  ;;  %p1737_p5 = scmp.lt.s32.totalorder %s1325_s28, 8 }
  0x16   : > { %1756 = sst [smem:[#allocation17_spill]] %s1795_s29  ;;  %p78_p4 = por %p76_p2, %p51_p0 }
  0x17   : > { %s66_s7 = ssub.s32 %s1317_s26, %s1795_s29  ;;  %s229_s8 = sand.u32 1, %s1325_s28  }
  0x18   : > { %p67_p6 = scmp.eq.s32.totalorder %s66_s7, 0  ;;  %s231_s10 = sand.u32 1, %s1293_s20  }
  0x19   : > { %s1447_s11 = sshll.u32 %s231_s10, 7  ;;  %s842_s12 = sshll.u32 %s1317_s26, 7 }
  0x1a   : > { %s1444_s9 = scalar_select %p67_p6, %s1293_s20, %s69_s6  }
  0x1b   : > { %s1758_s1 = sld [smem:[#allocation23_spill]]  ;;  %s233_s16 = scalar_lea.vmem [#allocation6], %s1447_s11 }
  0x1c   : > { %1757 = sst [smem:[#allocation18_spill]] %s1444_s9  ;;  %s239_s17 = sshll.u32 %s233_s16, 4  ;;  %s240_s17 = int_to_ptr.vmem [resolvable:$true] %s239_s17 }
  0x1d   : > { %p1456_p7 = pnand %p1737_p5, %p78_p4  ;;  %p846_p8 = scmp.ge.s32.totalorder %s1325_s28, 1 }
  0x1e   : > { %s1461_s6 = scalar_lea.sflag [#allocation7], %s229_s8  ;;  %s1130_s7 = scalar_lea.vmem %s240_s17, 2048 }
  0x1f   : > { %p1736_p9 = pneg %p1456_p7  ;;  %p1131_p10 = scmp.ne.s32.totalorder %s240_s17, %s1130_s7 }
  0x20   : > { %s1327_s10 = smov [#allocation6]  }
  0x21   : > { %s238_s15 = scalar_lea.hbm %s1758_s1, %s842_s12  ;;  %p1133_p11 = pnand %p1131_p10, %p1736_p9 }
  0x22   : > { %s1135_s12 = sshll.u32 %s1327_s10, 4  ;;  %s1136_s12 = int_to_ptr.vmem [resolvable:$false] %s1135_s12 }
  0x23   : > { %p1134_p12 = pneg %p1133_p11  ;;  %s1137_s13 = scalar_lea.vmem %s1136_s12, 4096 }
  0x24   : > { %p1138_p13 = scmp.lt.s32.totalorder %s240_s17, %s1136_s12  ;;  %p1139_p2 = scmp.lt.s32.totalorder %s1137_s13, %s1130_s7 }
  0x26   : > { %p1140_p4 = por %p1139_p2, %p1138_p13 }
  0x28   : > { %p1141_p6 = pnand %p1140_p4, %p1134_p12 }
  0x2a   : > { %1144 = shalt.err (!%p1141_p6)
}
  0x2b   : > { %s1328_s14 = smov 256   ;;  %s1734_s8 = smov 128  }
  0x2c   : > { %s1738_s16 = smov 8   ;;  %p274_p10 = scmp.lt.s32.totalorder %s1325_s28, 9 }
  0x2d   : > { %1013 = dma.hbm_to_vmem [thread:$0]  (!%p1456_p7), %s238_s15, 2048, %s240_s17, %s1461_s6, %s1328_s14, %s1734_s8, %s1738_s16  }
  0x2e   : > { %p1476_p11 = pnand %p846_p8, %p274_p10  ;;  %s1481_s10 = sadd.s32 4294967295, %s1325_s28  }
  0x2f   : > { %s835_s12 = sadd.s32 4294967294, %s1325_s28   ;;  %s36_s13 = sadd.s32 1, %s1321_s27 }
  0x30   : > { %s43_s1 = sadd.s32 1, %s1305_s23  ;;  %s1797_s13 = smov (!%p1424_p1, %s36_s13), %s1321_s27 }
  0x31   : > { %p50_p12 = scmp.ne.s32.totalorder %s1305_s23, %s1301_s22  ;;  %p56_p13 = scmp.ne.s32.totalorder %s1301_s22, %s1297_s21 }
  0x32   : > { %p38_p8 = scmp.ge.s32.totalorder %s1797_s13, 4  ;;  %p57_p2 = scmp.eq.s32.totalorder %s1481_s10, 0 }
  0x33   : > { %p1496_p4 = por %p51_p0, %p50_p12  ;;  %p179_p6 = scmp.eq.s32.totalorder %s1481_s10, 7 }
  0x34   : > { %s1799_s13 = smov (%p38_p8, %s1797_s13), 0  ;;  %p1506_p1 = por %p57_p2, %p56_p13 }
  0x35   : > { %1762 = sst [smem:[#allocation19_spill]] %s1799_s13  ;;  %p1513_p10 = por %p82_p3, %p57_p2 }
  0x36   : > { %s40_s14 = ssub.s32 %s1321_s27, %s1799_s13  ;;  %p1519_p0 = por %p179_p6, %p50_p12 }
  0x37   : > { %p41_p9 = scmp.eq.s32.totalorder %s40_s14, 0  ;;  %p185_p5 = scmp.eq.s32.totalorder %s835_s12, 7 }
  0x38   : > { %s1765_s8 = scalar_select %p1519_p0, 1, 0 }
  0x39   : > { %s208_s16 = sand.u32 1, %s1305_s23   ;;  %s860_s29 = sshll.u32 %s1321_s27, 10 }
  0x3a   : > { %1766 = sst [smem:[#allocation20_spill]] %s1765_s8  ;;  %p1531_p8 = por %p185_p5, %p56_p13 }
  0x3b   : > { %s1526_s9 = scalar_select %p41_p9, %s1305_s23, %s43_s1  }
  0x3c   : > { %s1768_s20 = scalar_select %p1531_p8, 1, 0 }
  0x3d   : > { %1767 = sst [smem:[#allocation21_spill]] %s1526_s9  ;;  %s838_s18 = sshll.u32 %s208_s16, 6 }
  0x3e   : > { %s1769_s0 = sld [smem:[#allocation22_spill]]  ;;  %p1770_p3 = scmp.lt.s32.totalorder %s1325_s28, 8 }
  0x3f   : > { %s212_s12 = scalar_lea.vmem [#allocation3], %s838_s18  ;;  %s209_s14 = scalar_lea.sflag [#allocation4], %s208_s16 }
  0x40   : > { %p1542_p12 = pnand %p1770_p3, %p1496_p4  ;;  %s219_s1 = sshll.u32 %s212_s12, 4  ;;  %s220_s1 = int_to_ptr.vmem [resolvable:$true] %s219_s1 }
  0x41   : > { %s1158_s27 = scalar_lea.vmem %s220_s1, 1024  ;;  %s1331_s9 = smov [#allocation3]  }
  0x42   : > { %p1147_p5 = pneg %p1542_p12  ;;  %p1159_p9 = scmp.ne.s32.totalorder %s220_s1, %s1158_s27 }
  0x43   : > { %s1163_s4 = sshll.u32 %s1331_s9, 4  ;;  %s1164_s4 = int_to_ptr.vmem [resolvable:$false] %s1163_s4 }
  0x44   : > { %s218_s13 = scalar_lea.hbm %s1769_s0, %s860_s29  ;;  %p1161_p13 = pnand %p1159_p9, %p1147_p5 }
  0x45   : > { %s1165_s25 = scalar_lea.vmem %s1164_s4, 2048  ;;  %p1166_p6 = scmp.lt.s32.totalorder %s220_s1, %s1164_s4 }
  0x46   : > { %p1162_p2 = pneg %p1161_p13  ;;  %p1167_p4 = scmp.lt.s32.totalorder %s1165_s25, %s1158_s27 }
  0x48   : > { %p1168_p3 = por %p1167_p4, %p1166_p6 }
  0x4a   : > { %p1169_p8 = pnand %p1168_p3, %p1162_p2 }
  0x4c   : > { %1172 = shalt.err (!%p1169_p8)
}
  0x4d   : > { %s1772_s29 = smov 8   ;;  %s1773_s15 = smov 128  }
  0x4e   : > { %1010 = dma.hbm_to_vmem [thread:$0]  (!%p1542_p12), %s218_s13, 1024, %s220_s1, %s209_s14, %s1773_s15, %s1773_s15, %s1772_s29  }
  0x4f   : > { %s861_s16 = sshll.u32 %s1317_s26, 11  ;;  %s259_s18 = scalar_lea.vmem [#allocation8], %s1447_s11 }
  0x50   : > { %s266_s12 = sshll.u32 %s259_s18, 4  ;;  %s265_s4 = scalar_lea.hbm %s1730_s3, %s861_s16  ;;  %s267_s12 = int_to_ptr.vmem [resolvable:$true] %s266_s12 }
  0x51   : > { %s1186_s27 = scalar_lea.vmem %s267_s12, 2048  ;;  %p1774_p8 = pneg %p1456_p7 }
  0x52   : > { %p1187_p5 = scmp.ne.s32.totalorder %s267_s12, %s1186_s27  ;;  %s1332_s8 = smov [#allocation8]  }
  0x53   : > { %s1191_s25 = sshll.u32 %s1332_s8, 4  ;;  %s1192_s25 = int_to_ptr.vmem [resolvable:$false] %s1191_s25 }
  0x54   : > { %p1189_p9 = pnand %p1187_p5, %p1774_p8  ;;  %s1193_s23 = scalar_lea.vmem %s1192_s25, 4096 }
  0x55   : > { %p1194_p2 = scmp.lt.s32.totalorder %s267_s12, %s1192_s25  ;;  %p1195_p12 = scmp.lt.s32.totalorder %s1193_s23, %s1186_s27 }
  0x56   : > { %p1190_p13 = pneg %p1189_p9 }
  0x57   : > { %p1196_p6 = por %p1195_p12, %p1194_p2 }
  0x59   : > { %p1197_p4 = pnand %p1196_p6, %p1190_p13 }
  0x5b   : > { %1200 = shalt.err (!%p1197_p4)
}
  0x5c   : > { %1016 = dma.hbm_to_vmem [thread:$0]  (!%p1456_p7), %s265_s4, 2048, %s267_s12, %s1461_s6, %s1773_s15, %s1773_s15, %s1772_s29  }
  0x5d   : > { %278 = sbr.rel (%p1476_p11) target bundleno = 594 (0x252), region = 40  ;;  %s1570_s0 = sand.u32 (!%p1476_p11), 1, %s1301_s22  }
  0x5e   : > { %s847_s23 = sshll.u32 (!%p1476_p11), %s1570_s0, 6  ;;  %s281_s11 = scalar_lea.sflag (!%p1476_p11), [#allocation4], %s1570_s0 }
  0x5f   : > { %s1574_s13 = scalar_lea.vmem (!%p1476_p11), [#allocation3], %s847_s23 }
  0x62   : > { %1272 = dma.done.wait (%p1506_p1), %s281_s11, 1024  }
  0x63   : > { %1274 = vsyncadd (%p1506_p1), %s281_s11, 4294966272  ;;  %s289_s5 = sand.u32 1, %s1481_s10   ;;  %s291_s6 = sand.u32 1, %s1289_s19  }
  0x64   : > { %s848_s7 = sshll.u32 %s291_s6, 7  ;;  %s290_s1 = scalar_lea.sflag [#allocation7], %s289_s5 }
  0x65   : > { %s1582_s14 = scalar_lea.vmem [#allocation6], %s848_s7 }
  0x66   : > { %1276 = dma.done.wait (%p1513_p10), %s290_s1, 4096  }
  0x67   : > { %1278 = vsyncadd (%p1513_p10), %s290_s1, 4294963200  ;;  %p343_p7 = scmp.lt.s32.totalorder %s1309_s24, 1  ;;  %s1596_s16 = scalar_lea.vmem [#allocation8], %s848_s7 }
  0x68   : > { %s1598_s18 = scalar_lea.vmem [#allocation9], %s847_s23  ;;  %p851_p11 = scmp.ne.s32.totalorder %s1309_s24, 0 }
  0x69   : > { %s1590_s29 = scalar_select %p343_p7, %s1309_s24, 1 }
  0x6a   : > { %351 = sbr.rel (%p851_p11) target bundleno = 116 (0x74), region = 56 }
  0x6b   : > { %s345_s10 = scalar_lea.vmem %s1729_s2, %s1590_s29 }
  0x6f   : > { %v1333_v0 = vmov 0.0  }
  0x70   : > { %352 = vst [vmem:[#allocation2 + $0x30] sm:$0xff] %v1333_v0  ;;  %353 = vst [vmem:[#allocation2] sm:$0xff] %v1333_v0 }
  0x71   : > { %354 = vst [vmem:[#allocation2 + $0x18] sm:$0xff] %v1333_v0  ;;  %355 = vst [vmem:[#allocation2 + $0x10] sm:$0xff] %v1333_v0 }
  0x72   : > { %356 = vst [vmem:[#allocation2 + $0x8] sm:$0xff] %v1333_v0  ;;  %357 = vst [vmem:[#allocation2 + $0x20] sm:$0xff] %v1333_v0 }
  0x73   : > { %358 = vst [vmem:[#allocation2 + $0x28] sm:$0xff] %v1333_v0  ;;  %359 = vst [vmem:[#allocation2 + $0x38] sm:$0xff] %v1333_v0 }
  0x74 PF: > { %v383_v1 = vld [vmem:[%s1582_s14 + $0x78] sm:$0xff]  ;;  %v382_v2 = vld [vmem:[%s1582_s14 + $0x70] sm:$0xff]  ;;  %v381_v3 = vld [vmem:[%s1582_s14 + $0x68] sm:$0xff]  ;;  %p853_p1 = scmp.ne.s32.totalorder %s1309_s24, 1 }
  0x75   : > { %911 = vmatprep.subr.mxu0 %v383_v1  ;;  %v380_v4 = vld [vmem:[%s1582_s14 + $0x60] sm:$0xff]  ;;  %v379_v6 = vld [vmem:[%s1582_s14 + $0x58] sm:$0xff]  ;;  %v378_v7 = vld [vmem:[%s1582_s14 + $0x50] sm:$0xff]  ;;  %s1775_s27 = sld [smem:[#allocation24_spill]] (!%p853_p1) }
  0x76   : > { %912 = vmatpush3.msra.mxu0 %v383_v1  ;;  %v360_v5 = vld [vmem:[%s1574_s13] sm:$0xff]  ;;  %v527_v8 = vld [vmem:[%s1596_s16 + $0x78] sm:$0xff]  ;;  %v526_v9 = vld [vmem:[%s1596_s16 + $0x70] sm:$0xff] }
  0x77   : > { %913 = vmatprep.subr.mxu0 %v382_v2  ;;  %943 = vmatprep.mubr.f32.mxu0 %v360_v5  ;;  %v377_v10 = vld [vmem:[%s1582_s14 + $0x48] sm:$0xff]  ;;  %v376_v12 = vld [vmem:[%s1582_s14 + $0x40] sm:$0xff]  ;;  %v375_v14 = vld [vmem:[%s1582_s14 + $0x38] sm:$0xff] }
  0x78   : > { %914 = vmatpush3.msra.mxu0 %v382_v2  ;;  %955 = vmatprep.subr.mxu1 %v527_v8  ;;  %v525_v11 = vld [vmem:[%s1596_s16 + $0x68] sm:$0xff]  ;;  %v524_v13 = vld [vmem:[%s1596_s16 + $0x60] sm:$0xff]  ;;  %v523_v15 = vld [vmem:[%s1596_s16 + $0x58] sm:$0xff] }
  0x79   : > { %915 = vmatprep.subr.mxu0 %v381_v3  ;;  %956 = vmatpush3.msra.mxu1 %v527_v8  ;;  %v374_v16 = vld [vmem:[%s1582_s14 + $0x30] sm:$0xff]  ;;  %v373_v18 = vld [vmem:[%s1582_s14 + $0x28] sm:$0xff]  ;;  %v372_v20 = vld [vmem:[%s1582_s14 + $0x20] sm:$0xff] }
  0x7a   : > { %916 = vmatpush3.msra.mxu0 %v381_v3  ;;  %957 = vmatprep.subr.mxu1 %v526_v9  ;;  %v522_v17 = vld [vmem:[%s1596_s16 + $0x50] sm:$0xff]  ;;  %v521_v19 = vld [vmem:[%s1596_s16 + $0x48] sm:$0xff]  ;;  %v520_v21 = vld [vmem:[%s1596_s16 + $0x40] sm:$0xff] }
  0x7b   : > { %917 = vmatprep.subr.mxu0 %v380_v4  ;;  %958 = vmatpush3.msra.mxu1 %v526_v9  ;;  %v371_v22 = vld [vmem:[%s1582_s14 + $0x18] sm:$0xff]  ;;  %v370_v24 = vld [vmem:[%s1582_s14 + $0x10] sm:$0xff]  ;;  %v369_v26 = vld [vmem:[%s1582_s14 + $0x8] sm:$0xff] }
  0x7c   : > { %918 = vmatpush3.msra.mxu0 %v380_v4  ;;  %959 = vmatprep.subr.mxu1 %v525_v11  ;;  %v519_v23 = vld [vmem:[%s1596_s16 + $0x38] sm:$0xff]  ;;  %v518_v25 = vld [vmem:[%s1596_s16 + $0x30] sm:$0xff]  ;;  %v517_v27 = vld [vmem:[%s1596_s16 + $0x28] sm:$0xff] }
  0x7d   : > { %919 = vmatprep.subr.mxu0 %v379_v6  ;;  %960 = vmatpush3.msra.mxu1 %v525_v11  ;;  %v368_v28 = vld [vmem:[%s1582_s14] sm:$0xff]  ;;  %v361_v30 = vld [vmem:[%s1574_s13 + $0x8] sm:$0xff]  ;;  %v362_v31 = vld [vmem:[%s1574_s13 + $0x10] sm:$0xff] }
  0x7e   : > { %920 = vmatpush3.msra.mxu0 %v379_v6  ;;  %961 = vmatprep.subr.mxu1 %v524_v13  ;;  %v516_v29 = vld [vmem:[%s1596_s16 + $0x20] sm:$0xff]  ;;  %v363_v32 = vld [vmem:[%s1574_s13 + $0x18] sm:$0xff]  ;;  %v365_v34 = vld [vmem:[%s1574_s13 + $0x28] sm:$0xff] }
  0x7f   : > { %921 = vmatprep.subr.mxu0 %v378_v7  ;;  %962 = vmatpush3.msra.mxu1 %v524_v13  ;;  %v364_v33 = vld [vmem:[%s1574_s13 + $0x20] sm:$0xff]  ;;  %v366_v35 = vld [vmem:[%s1574_s13 + $0x30] sm:$0xff]  ;;  %v367_v36 = vld [vmem:[%s1574_s13 + $0x38] sm:$0xff] }
  0x80   : > { %922 = vmatpush3.msra.mxu0 %v378_v7  ;;  %963 = vmatprep.subr.mxu1 %v523_v15  ;;  %v515_v37 = vld [vmem:[%s1596_s16 + $0x18] sm:$0xff]  ;;  %v514_v38 = vld [vmem:[%s1596_s16 + $0x10] sm:$0xff]  ;;  %v513_v39 = vld [vmem:[%s1596_s16 + $0x8] sm:$0xff] }
  0x81   : > { %923 = vmatprep.subr.mxu0 %v377_v10  ;;  %964 = vmatpush3.msra.mxu1 %v523_v15  ;;  %v512_v40 = vld [vmem:[%s1596_s16] sm:$0xff]  ;;  %v504_v4 = vld [vmem:[#allocation2 + $0x30] sm:$0xff] }
  0x82   : > { %924 = vmatpush3.msra.mxu0 %v377_v10  ;;  %965 = vmatprep.subr.mxu1 %v522_v17  ;;  %v852_v41 = vld [vmem:[%s345_s10] ss:$0 sm:$0xff]  ;;  %v507_v7 = vld [vmem:[#allocation2 + $0x10] sm:$0xff]  ;;  %v506_v10 = vld [vmem:[#allocation2 + $0x18] sm:$0xff] }
  0x83   : > { %925 = vmatprep.subr.mxu0 %v376_v12  ;;  %966 = vmatpush3.msra.mxu1 %v522_v17  ;;  %v505_v2 = vld [vmem:[#allocation2] sm:$0xff] }
  0x84   : > { %926 = vmatpush3.msra.mxu0 %v376_v12  ;;  %967 = vmatprep.subr.mxu1 %v521_v19  ;;  %v509_v13 = vld [vmem:[#allocation2 + $0x20] sm:$0xff] }
  0x85   : > { %927 = vmatprep.subr.mxu0 %v375_v14  ;;  %968 = vmatpush3.msra.mxu1 %v521_v19  ;;  %v511_v19 = vld [vmem:[#allocation2 + $0x38] sm:$0xff] }
  0x86   : > { %928 = vmatpush3.msra.mxu0 %v375_v14  ;;  %969 = vmatprep.subr.mxu1 %v520_v21 }
  0x87   : > { %929 = vmatprep.subr.mxu0 %v374_v16  ;;  %970 = vmatpush3.msra.mxu1 %v520_v21 }
  0x88   : > { %930 = vmatpush3.msra.mxu0 %v374_v16  ;;  %971 = vmatprep.subr.mxu1 %v519_v23  ;;  %v508_v16 = vld [vmem:[#allocation2 + $0x8] sm:$0xff] }
  0x89   : > { %931 = vmatprep.subr.mxu0 %v373_v18  ;;  %972 = vmatpush3.msra.mxu1 %v519_v23 }
  0x8a   : > { %932 = vmatpush3.msra.mxu0 %v373_v18  ;;  %973 = vmatprep.subr.mxu1 %v518_v25 }
  0x8b   : > { %933 = vmatprep.subr.mxu0 %v372_v20  ;;  %974 = vmatpush3.msra.mxu1 %v518_v25 }
  0x8c   : > { %934 = vmatpush3.msra.mxu0 %v372_v20  ;;  %975 = vmatprep.subr.mxu1 %v517_v27 }
  0x8d   : > { %935 = vmatprep.subr.mxu0 %v371_v22  ;;  %976 = vmatpush3.msra.mxu1 %v517_v27 }
  0x8e   : > { %936 = vmatpush3.msra.mxu0 %v371_v22  ;;  %977 = vmatprep.subr.mxu1 %v516_v29  ;;  %v510_v22 = vld [vmem:[#allocation2 + $0x28] sm:$0xff] }
  0x8f   : > { %937 = vmatprep.subr.mxu0 %v370_v24  ;;  %978 = vmatpush3.msra.mxu1 %v516_v29 }
  0x90   : > { %938 = vmatpush3.msra.mxu0 %v370_v24  ;;  %979 = vmatprep.subr.mxu1 %v515_v37 }
  0x91   : > { %939 = vmatprep.subr.mxu0 %v369_v26  ;;  %980 = vmatpush3.msra.mxu1 %v515_v37 }
  0x92   : > { %940 = vmatpush3.msra.mxu0 %v369_v26  ;;  %981 = vmatprep.subr.mxu1 %v514_v38 }
  0x93   : > { %941 = vmatprep.subr.mxu0 %v368_v28  ;;  %982 = vmatpush3.msra.mxu1 %v514_v38 }
  0x94   : > { %942 = vmatpush3.msra.mxu0 %v368_v28  ;;  %983 = vmatprep.subr.mxu1 %v513_v39 }
  0x95   : > { %944 = vmatmul.mubr.f32.vlgmr.msra.gmra.mxu0 %v361_v30  ;;  %984 = vmatpush3.msra.mxu1 %v513_v39 }
  0x96   : > { %946 = vmatprep.mubr.f32.mxu0 %v362_v31  ;;  %985 = vmatprep.subr.mxu1 %v512_v40 }
  0x97   : > { %986 = vmatpush3.msra.mxu1 %v512_v40 }
  0x99   : > { %947 = vmatmul.mubr.f32.gmra.mxu0 %v363_v32 }
  0x9a   : > { %949 = vmatprep.mubr.f32.mxu0 %v364_v33 }
  0x9d   : > { %950 = vmatmul.mubr.f32.gmra.mxu0 %v365_v34 }
  0x9e   : > { %952 = vmatprep.mubr.f32.mxu0 %v366_v35 }
  0xa1   : > { %953 = vmatmul.mubr.f32.gmra.mxu0 %v367_v36 }
 0x155   : > { %v945_v42 = vpop.f32.mrf.mxu0 }
 0x156   : > { %v463_v43 = vadd.f32 %v945_v42, %v852_v41 }
 0x157   : > { %v457_v44 = vpop.f32.mrf.mxu0 }
 0x158   : > { %v458_v45 = vadd.f32 %v852_v41, %v457_v44  ;;  %v497_v48 = vmax.f32 %v463_v43, 0.0 }
 0x159   : > { %v948_v46 = vpop.f32.mrf.mxu0 }
 0x15a   : > { %v496_v47 = vmax.f32 %v458_v45, 0.0  ;;  %v473_v49 = vadd.f32 %v948_v46, %v852_v41 }
 0x15b   : > { %v467_v50 = vpop.f32.mrf.mxu0 }
 0x15c   : > { %v468_v51 = vadd.f32 %v852_v41, %v467_v50  ;;  %987 = vmatprep.mubr.f32.mxu1 %v496_v47  ;;  %v499_v54 = vmax.f32 %v473_v49, 0.0 }
 0x15d   : > { %v951_v52 = vpop.f32.mrf.mxu0  ;;  %988 = vmatmul.mubr.f32.vlgmr.msra.gmra.mxu1 %v497_v48 }
 0x15e   : > { %v498_v53 = vmax.f32 %v468_v51, 0.0  ;;  %v483_v55 = vadd.f32 %v951_v52, %v852_v41 }
 0x15f   : > { %v477_v56 = vpop.f32.mrf.mxu0 }
 0x160   : > { %v478_v57 = vadd.f32 %v852_v41, %v477_v56  ;;  %990 = vmatprep.mubr.f32.mxu1 %v498_v53  ;;  %v501_v60 = vmax.f32 %v483_v55, 0.0 }
 0x161   : > { %v954_v58 = vpop.f32.mrf.mxu0  ;;  %991 = vmatmul.mubr.f32.gmra.mxu1 %v499_v54 }
 0x162   : > { %v500_v59 = vmax.f32 %v478_v57, 0.0  ;;  %v493_v61 = vadd.f32 %v954_v58, %v852_v41 }
 0x163   : > { %v487_v62 = vpop.f32.mrf.mxu0 }
 0x164   : > { %v488_v63 = vadd.f32 %v852_v41, %v487_v62  ;;  %993 = vmatprep.mubr.f32.mxu1 %v500_v59  ;;  %v503_v1 = vmax.f32 %v493_v61, 0.0 }
 0x165   : > { %994 = vmatmul.mubr.f32.gmra.mxu1 %v501_v60 }
 0x166   : > { %v502_v0 = vmax.f32 %v488_v63, 0.0 }
 0x168   : > { %996 = vmatprep.mubr.f32.mxu1 %v502_v0 }
 0x169   : > { %997 = vmatmul.mubr.f32.gmra.mxu1 %v503_v1 }
 0x21d   : > { %v989_v3 = vpop.f32.mrf.mxu1 }
 0x21e   : > { %v634_v5 = vadd.f32 %v989_v3, %v505_v2 }
 0x21f   : > { %v594_v6 = vpop.f32.mrf.mxu1 }
 0x220   : > { %642 = vst [vmem:[#allocation2] sm:$0xff] %v634_v5  ;;  %v633_v8 = vadd.f32 %v594_v6, %v504_v4 }
 0x221   : > { %v992_v9 = vpop.f32.mrf.mxu1 }
 0x222   : > { %641 = vst [vmem:[#allocation2 + $0x30] sm:$0xff] %v633_v8  ;;  %v636_v11 = vadd.f32 %v992_v9, %v507_v7 }
 0x223   : > { %v604_v12 = vpop.f32.mrf.mxu1 }
 0x224   : > { %644 = vst [vmem:[#allocation2 + $0x10] sm:$0xff] %v636_v11  ;;  %v635_v14 = vadd.f32 %v604_v12, %v506_v10 }
 0x225   : > { %v995_v15 = vpop.f32.mrf.mxu1 }
 0x226   : > { %643 = vst [vmem:[#allocation2 + $0x18] sm:$0xff] %v635_v14  ;;  %v638_v17 = vadd.f32 %v995_v15, %v509_v13 }
 0x227   : > { %v614_v18 = vpop.f32.mrf.mxu1 }
 0x228   : > { %646 = vst [vmem:[#allocation2 + $0x20] sm:$0xff] %v638_v17  ;;  %v637_v20 = vadd.f32 %v614_v18, %v508_v16 }
 0x229   : > { %v998_v21 = vpop.f32.mrf.mxu1 }
 0x22a   : > { %645 = vst [vmem:[#allocation2 + $0x8] sm:$0xff] %v637_v20  ;;  %v640_v23 = vadd.f32 %v998_v21, %v511_v19  ;;  %652 = sbr.rel (%p853_p1) target bundleno = 569 (0x239), region = 60 }
 0x22b   : > { %v624_v24 = vpop.f32.mrf.mxu1 }
 0x22c   : > { %648 = vst [vmem:[#allocation2 + $0x38] sm:$0xff] %v640_v23  ;;  %v639_v25 = vadd.f32 %v624_v24, %v510_v22 }
 0x22e   : > { %647 = vst [vmem:[#allocation2 + $0x28] sm:$0xff] %v639_v25 }
 0x22f   : > { %v653_v26 = vld [vmem:[#allocation2 + $0x30] sm:$0xff]  ;;  %v854_v27 = vld [vmem:[%s1775_s27] ss:$0 sm:$0xff]  ;;  %v655_v31 = vld [vmem:[#allocation2 + $0x18] sm:$0xff] }
 0x230   : > { %v654_v28 = vld [vmem:[#allocation2] sm:$0xff]  ;;  %v668_v29 = vadd.f32 %v854_v27, %v653_v26  ;;  %v656_v32 = vld [vmem:[#allocation2 + $0x10] sm:$0xff]  ;;  %v670_v34 = vadd.f32 %v854_v27, %v655_v31 }
 0x231   : > { %v669_v30 = vadd.f32 %v854_v27, %v654_v28  ;;  %v657_v33 = vld [vmem:[#allocation2 + $0x8] sm:$0xff]  ;;  %v671_v35 = vadd.f32 %v854_v27, %v656_v32  ;;  %v658_v37 = vld [vmem:[#allocation2 + $0x20] sm:$0xff] }
 0x232   : > { %v672_v36 = vadd.f32 %v854_v27, %v657_v33  ;;  %676 = vst [vmem:[%s1598_s18] sm:$0xff] %v668_v29  ;;  %v673_v40 = vadd.f32 %v854_v27, %v658_v37  ;;  %678 = vst [vmem:[%s1598_s18 + $0x10] sm:$0xff] %v670_v34 }
 0x233   : > { %v660_v39 = vld [vmem:[#allocation2 + $0x38] sm:$0xff]  ;;  %677 = vst [vmem:[%s1598_s18 + $0x8] sm:$0xff] %v669_v30  ;;  %679 = vst [vmem:[%s1598_s18 + $0x18] sm:$0xff] %v671_v35 }
 0x234   : > { %v675_v42 = vadd.f32 %v854_v27, %v660_v39  ;;  %680 = vst [vmem:[%s1598_s18 + $0x20] sm:$0xff] %v672_v36  ;;  %681 = vst [vmem:[%s1598_s18 + $0x28] sm:$0xff] %v673_v40 }
 0x235   : > { %v659_v38 = vld [vmem:[#allocation2 + $0x28] sm:$0xff] }
 0x236   : > { %v674_v41 = vadd.f32 %v854_v27, %v659_v38  ;;  %683 = vst [vmem:[%s1598_s18 + $0x38] sm:$0xff] %v675_v42 }
 0x238   : > { %682 = vst [vmem:[%s1598_s18 + $0x30] sm:$0xff] %v674_v41 }
 0x239 PF: > { %s1776_s24 = sld [smem:[#allocation15_spill]]  ;;  %s698_s6 = sshll.u32 %s1598_s18, 4  ;;  %s1665_s6 = int_to_ptr.vmem [resolvable:$true] %s698_s6 }
 0x23a   : > { %s1778_s13 = sld [smem:[#allocation25_spill]]  ;;  %s685_s7 = scalar_lea.sflag [#allocation5], %s1570_s0 }
 0x23b   : > { %s1201_s1 = scalar_lea.vmem %s1665_s6, 1024  ;;  %s1334_s14 = smov [#allocation9]  }
 0x23c   : > { %p1202_p10 = scmp.ne.s32.totalorder %s1665_s6, %s1201_s1  ;;  %s1205_s29 = sshll.u32 %s1334_s14, 4  ;;  %s1206_s29 = int_to_ptr.vmem [resolvable:$false] %s1205_s29 }
 0x23d   : > { %s1207_s30 = scalar_lea.vmem %s1206_s29, 2048  ;;  %p1208_p8 = scmp.lt.s32.totalorder %s1665_s6, %s1206_s29 }
 0x23e   : > { %p1203_p3 = pnand %p1202_p10, %p1519_p0  ;;  %p1209_p9 = scmp.lt.s32.totalorder %s1207_s30, %s1201_s1 }
 0x23f   : > { %s862_s25 = sshll.u32 %s1776_s24, 10 }
 0x240   : > { %s1662_s5 = scalar_lea.hbm %s1778_s13, %s862_s25  ;;  %p1204_p5 = pneg %p1203_p3 }
 0x241   : > { %p1210_p13 = por %p1209_p9, %p1208_p8 }
 0x243   : > { %p1211_p2 = pnand %p1210_p13, %p1204_p5 }
 0x245   : > { %1214 = shalt.err (!%p1211_p2)
}
 0x246   : > { %s1215_s15 = scalar_lea.hbm %s1662_s5, 1024  ;;  %s1219_s18 = scalar_lea.hbm %s1778_s13, 4096 }
 0x247   : > { %p1216_p12 = scmp.ne.s32.totalorder %s1662_s5, %s1215_s15  ;;  %p1220_p7 = scmp.lt.s32.totalorder %s1662_s5, %s1778_s13 }
 0x248   : > { %p1221_p11 = scmp.lt.s32.totalorder %s1219_s18, %s1215_s15 }
 0x249   : > { %p1217_p6 = pnand %p1216_p12, %p1519_p0 }
 0x24a   : > { %p1222_p1 = por %p1221_p11, %p1220_p7 }
 0x24b   : > { %p1218_p4 = pneg %p1217_p6 }
 0x24d   : > { %p1223_p10 = pnand %p1222_p1, %p1218_p4 }
 0x24f   : > { %1226 = shalt.err (!%p1223_p10)
}
 0x250   : > { %s1335_s9 = smov 128   ;;  %s1336_s4 = smov 8  }
 0x251   : > { %1005 = dma.vmem_to_hbm [thread:$0]  (%p1519_p0), %s1665_s6, 1024, %s1662_s5, %s685_s7, %s1335_s9, %s1335_s9, %s1336_s4  }
 0x252 PF: > { %p1022_p3 = scmp.ge.s32.totalorder %s1325_s28, 2  ;;  %s713_s27 = sand.u32 1, %s1297_s21  }
 0x253   : > { %p1779_p5 = scmp.ne.s32.totalorder %s1768_s20, 0  ;;  %s714_s24 = scalar_lea.sflag [#allocation5], %s713_s27 }
 0x255   : > { %p1018_p8 = pnand %p1022_p3, %p1779_p5 }
 0x257   : > { %p1019_p9 = pneg %p1018_p8 }
 0x259   : > { %1280 = dma.done.wait (%p1019_p9), %s714_s24, 1024  }
 0x25a   : > { %1282 = vsyncadd (%p1019_p9), %s714_s24, 4294966272  ;;  %s24_s28 = sadd.s32 1, %s1325_s28   ;;  %s1780_s25 = sld [smem:[#allocation13_spill]] }
 0x25b   : > { %p21_p13 = scmp.ge.s32.totalorder %s24_s28, 10   ;;  %s1781_s20 = sld [smem:[#allocation18_spill]] }
 0x25c   : > { %s1782_s0 = sld [smem:[#allocation14_spill]]  ;;  %s1787_s18 = smov %s1289_s19 }
 0x25d   : > { %s1783_s23 = sld [smem:[#allocation21_spill]]  ;;  %s1789_s21 = smov %s1301_s22 }
 0x25e   : > { %s1784_s8 = sld [smem:[#allocation16_spill]]  ;;  %s1791_s24 = smov %s1317_s26 }
 0x25f   : > { %s1785_s11 = sld [smem:[#allocation17_spill]] }
 0x260   : > { %s1786_s27 = sld [smem:[#allocation19_spill]]  ;;  %s1788_s19 = smov %s1780_s25 }
 0x261   :  { %23 = sbr.rel (!%p21_p13) target bundleno = 16 (0x10), region = 120 }
 0x262   : > { %s1790_s22 = smov %s1782_s0 }
 0x264   : > { %s1792_s25 = smov %s1784_s8 }
 0x265   : > { %s1793_s26 = smov %s1785_s11 }
 0x266   :  { %719 = vsyncpa [#allocation4], 1 }
 0x267   :  { %721 = vsyncpa [#allocation4 + $0x1], 1 }
 0x268   :  { %722 = vsyncpa [#allocation7], 1 }
 0x269   :  { %724 = vsyncpa [#allocation7 + $0x1], 1 }
 0x26a   :  { %725 = vsyncpa [#allocation5], 1 }
 0x26b   :  { %727 = vsyncpa [#allocation5 + $0x1], 1 }

</bundles_post_ra>
